<compile_context>
chip_gen: v7x
topology: tpu7x:2x2x1
jax: 0.10.0
libtpu: 0.0.40
codegen_flags: <defaults>
</compile_context>

<pallas_src>
import functools

import jax
import jax.numpy as jnp
from jax.experimental import pallas as pl
from jax.experimental.pallas import tpu as pltpu

BN_EPS = 1e-5  # nn.BatchNorm2d default eps


def basic_conv2d(x_nchw, weight, conv_bias, gamma, beta,
                 running_mean, running_var, *, stride, padding,
                 max_band_out_rows=4096):
    N, Cin, H, W = x_nchw.shape
    Cout, _, kh, kw = weight.shape
    s = stride
    Hp, Wp = H + 2 * padding, W + 2 * padding
    Ho = (Hp - kh) // s + 1
    Wo = (Wp - kw) // s + 1

    # Dense (stride-1) output grid over the padded image; the wrapper keeps
    # only the strided / in-bounds positions afterwards.
    Hd = (Ho - 1) * s + 1            # dense output H rows actually needed
    KWC = kw * Cin                   # width-packed contraction block
    K = kh * KWC

    # Lane-pad Cout: 128 for small Cout (exact v5e MXU width); multiples of
    # 256 once Cout >= 128 so a v6e/v7x MXU pass fills its 256-wide output.
    COUTP = 128 if Cout <= 128 else 256 * pl.cdiv(Cout, 256)

    # H-banding: BAND_HD dense output H rows per grid step, (kh-1)-row halo.
    BAND_HD = max(1, min(Hd, max_band_out_rows // Wp))
    n_bands = pl.cdiv(Hd, BAND_HD)
    Hd_pad = n_bands * BAND_HD
    Hin_pad = Hd_pad + kh - 1        # input H rows the bands touch (w/ halo)
    R_out = BAND_HD * Wp             # dense output rows per band
    R_in = (BAND_HD + kh - 1) * Wp   # input rows per band (incl. halo)

    # ---- fold BatchNorm(eval) + conv bias into a weight scale + one bias ---
    scale = gamma * jax.lax.rsqrt(running_var + BN_EPS)            # (Cout,)
    fused_bias = (conv_bias - running_mean) * scale + beta         # (Cout,)
    bias_p = jnp.pad(fused_bias.astype(jnp.float32).reshape(1, Cout),
                     ((0, 0), (0, COUTP - Cout)))                  # (1, COUTP)

    # PyTorch OIHW -> (kh, kw, Cin, Cout) -> (K, Cout); row index
    # i*(kw*Cin) + j*Cin + c so row-block i matches the width-packed LHS.
    w_mat = jnp.transpose(weight, (2, 3, 1, 0)).reshape(K, Cout)
    w_mat = (w_mat * scale[None, :]).astype(jnp.bfloat16)
    w_mat = jnp.pad(w_mat, ((0, 0), (0, COUTP - Cout)))            # (K, COUTP)

    # ---- layout glue (all on the small input side, in bf16) ----------------
    # NCHW -> NHWC, zero-pad spatially, width-only im2col: channel block j of
    # row (h, w) holds x_padded[h, w + j, :].
    x = jnp.transpose(x_nchw, (0, 2, 3, 1)).astype(jnp.bfloat16)   # NHWC
    xp = jnp.pad(x, ((0, 0), (padding, padding), (padding, padding), (0, 0)))
    xpw = jnp.pad(xp, ((0, 0), (0, 0), (0, kw - 1), (0, 0)))       # right halo
    xw = jnp.concatenate([xpw[:, :, j:j + Wp, :] for j in range(kw)],
                         axis=-1)                                  # (N,Hp,Wp,KWC)

    # Pad or slice the H extent to exactly the rows the bands touch (avoids
    # the negative-pad crash for stride>1 configs where Hd + kh - 1 < Hp).
    if Hin_pad >= Hp:
        xw = jnp.pad(xw, ((0, 0), (0, Hin_pad - Hp), (0, 0), (0, 0)))
    else:
        xw = xw[:, :Hin_pad]

    # Pre-gather each band together with its (kh-1)-row halo; duplication is
    # only (kh-1)/BAND_HD of the (small, bf16) input.
    band_rows = BAND_HD + kh - 1
    idx = (jnp.arange(n_bands)[:, None] * BAND_HD
           + jnp.arange(band_rows)[None, :])                       # (B, band_rows)
    xb = xw[:, idx].reshape(N, n_bands, R_in, KWC)                 # (N,B,R_in,KWC)

    def kernel(x_ref, w_ref, b_ref, o_ref):
        # x_ref: (R_in, KWC) bf16    w_ref: (K, COUTP) bf16
        # b_ref: (1, COUTP) f32      o_ref: (R_out, COUTP) bf16
        # kh shifted dots accumulated in a value (no scratch ref, one store).
        acc = jnp.dot(x_ref[pl.ds(0, R_out), :], w_ref[pl.ds(0, KWC), :],
                      preferred_element_type=jnp.float32)
        for i in range(1, kh):
            acc += jnp.dot(x_ref[pl.ds(i * Wp, R_out), :],
                           w_ref[pl.ds(i * KWC, KWC), :],
                           preferred_element_type=jnp.float32)
        y = acc + b_ref[...]                     # fused conv-bias + BatchNorm
        o_ref[...] = jnp.maximum(y, 0.0).astype(o_ref.dtype)        # ReLU

    out = pl.pallas_call(
        kernel,
        out_shape=jax.ShapeDtypeStruct((N, n_bands, R_out, COUTP),
                                       jnp.bfloat16),
        grid=(N, n_bands),
        in_specs=[
            pl.BlockSpec((None, None, R_in, KWC), lambda n, b: (n, b, 0, 0)),
            pl.BlockSpec((K, COUTP), lambda n, b: (0, 0)),
            pl.BlockSpec((1, COUTP), lambda n, b: (0, 0)),
        ],
        out_specs=pl.BlockSpec((None, None, R_out, COUTP),
                               lambda n, b: (n, b, 0, 0)),
        compiler_params=pltpu.CompilerParams(
            dimension_semantics=("parallel", "parallel")),
    )(xb, w_mat, bias_p)

    # One fancy slice: drop padded bands/rows, apply the H/W stride, drop the
    # padded channels; then NHWC -> NCHW and a single cast back up.
    out = out.reshape(N, Hd_pad, Wp, COUTP)
    out = out[:, :Hd:s, :(Wo - 1) * s + 1:s, :Cout]                # (N,Ho,Wo,C)
    return jnp.transpose(out, (0, 3, 1, 2)).astype(x_nchw.dtype)


def reference(x, weight, conv_bias, gamma, beta, mean, var, *, stride, padding):
    y = jax.lax.conv_general_dilated(
        x, weight, window_strides=(stride, stride),
        padding=[(padding, padding), (padding, padding)],
        dimension_numbers=('NCHW', 'OIHW', 'NCHW'))
    r = lambda v: v.reshape(1, -1, 1, 1)
    y = y + r(conv_bias)
    y = (y - r(mean)) / jnp.sqrt(r(var) + BN_EPS) * r(gamma) + r(beta)
    return jnp.maximum(y, 0.0)


if __name__ == "__main__":
    # Module config: BasicConv2d(in_channel=4, out_channel=8, kernel_size=3,
    #                            padding=1, stride=1)
    in_channel, out_channel, kernel_size, padding, stride = 4, 8, 3, 1, 1
    N, H, W = 2, 16, 16

    key = jax.random.PRNGKey(0)
    kx, kwt, kb, kg, kbe, km, kv = jax.random.split(key, 7)

    x = jax.random.normal(kx, (N, in_channel, H, W), dtype=jnp.float32)
    weight = 0.1 * jax.random.normal(
        kwt, (out_channel, in_channel, kernel_size, kernel_size), jnp.float32)
    conv_bias = 0.1 * jax.random.normal(kb, (out_channel,), jnp.float32)
    gamma = 1.0 + 0.1 * jax.random.normal(kg, (out_channel,), jnp.float32)
    beta = 0.1 * jax.random.normal(kbe, (out_channel,), jnp.float32)
    running_mean = 0.1 * jax.random.normal(km, (out_channel,), jnp.float32)
    running_var = 0.5 + jnp.abs(jax.random.normal(kv, (out_channel,), jnp.float32))

    # max_band_out_rows=160 -> BAND_HD=8, n_bands=2: exercises the H-banding
    # halo path and the 2-D (N, n_bands) parallel grid even at this tiny size.
    fn = jax.jit(functools.partial(basic_conv2d, stride=stride,
                                   padding=padding, max_band_out_rows=160))
    out = jax.block_until_ready(
        fn(x, weight, conv_bias, gamma, beta, running_mean, running_var))

    ref = reference(x, weight, conv_bias, gamma, beta, running_mean,
                    running_var, stride=stride, padding=padding)
    assert out.shape == ref.shape == (N, out_channel, H, W)
    # bf16 MXU inputs + bf16 kernel output (f32 accumulation) -> looser
    # tolerance than an all-f32 path; max |err| is typically ~1e-2 here.
    assert jnp.allclose(out, ref, atol=5e-2, rtol=5e-2), float(
        jnp.max(jnp.abs(out - ref)))

    print("KERNEL_OK")
</pallas_src>

<mosaic_0001>
module attributes {stable_mosaic.version = 11 : i64} {
  func.func @kernel(%arg0: i32, %arg1: i32, %arg2: memref<1x1x180x12xbf16, #tpu.memory_space<vmem>>, %arg3: memref<36x128xbf16, #tpu.memory_space<vmem>>, %arg4: memref<1x128xf32, #tpu.memory_space<vmem>>, %arg5: memref<1x1x144x128xbf16, #tpu.memory_space<vmem>>) attributes {dimension_semantics = [#tpu.dimension_semantics<parallel>, #tpu.dimension_semantics<parallel>], iteration_bounds = array<i64: 2, 2>, scalar_prefetch = 0 : i64, scratch_operands = 0 : i64, tpu.core_type = #tpu.core_type<tc>, window_params = [{transform_indices = @transform_0, window_bounds = array<i64: 1, 1, 180, 12>}, {pipeline_mode = #tpu.pipeline_mode<synchronous>, transform_indices = @transform_1, window_bounds = array<i64: 36, 128>}, {pipeline_mode = #tpu.pipeline_mode<synchronous>, transform_indices = @transform_2, window_bounds = array<i64: 1, 128>}, {transform_indices = @transform_3, window_bounds = array<i64: 1, 1, 144, 128>}]} {
    %c0 = arith.constant 0 : index
    %c0_0 = arith.constant 0 : index
    %c0_1 = arith.constant 0 : index
    %c0_2 = arith.constant 0 : index
    %0 = vector.load %arg2[%c0, %c0_0, %c0_1, %c0_2] : memref<1x1x180x12xbf16, #tpu.memory_space<vmem>>, vector<1x1x144x12xbf16>
    %1 = vector.shape_cast %0 : vector<1x1x144x12xbf16> to vector<144x12xbf16>
    %c0_3 = arith.constant 0 : index
    %c0_4 = arith.constant 0 : index
    %2 = vector.load %arg3[%c0_3, %c0_4] : memref<36x128xbf16, #tpu.memory_space<vmem>>, vector<12x128xbf16>
    %cst = arith.constant dense<0.000000e+00> : vector<144x128xf32>
    %3 = tpu.matmul %1, %2, %cst {dimension_numbers = #tpu.dot_dimension_numbers<[1], [0], [0], [1], [0, 0, 1, 1], [], []>} : vector<144x12xbf16>, vector<12x128xbf16>, vector<144x128xf32> -> vector<144x128xf32>
    %c0_5 = arith.constant 0 : index
    %c0_6 = arith.constant 0 : index
    %c18 = arith.constant 18 : index
    %c0_7 = arith.constant 0 : index
    %4 = vector.load %arg2[%c0_5, %c0_6, %c18, %c0_7] : memref<1x1x180x12xbf16, #tpu.memory_space<vmem>>, vector<1x1x144x12xbf16>
    %5 = vector.shape_cast %4 : vector<1x1x144x12xbf16> to vector<144x12xbf16>
    %c12 = arith.constant 12 : index
    %c0_8 = arith.constant 0 : index
    %6 = vector.load %arg3[%c12, %c0_8] : memref<36x128xbf16, #tpu.memory_space<vmem>>, vector<12x128xbf16>
    %cst_9 = arith.constant dense<0.000000e+00> : vector<144x128xf32>
    %7 = tpu.matmul %5, %6, %cst_9 {dimension_numbers = #tpu.dot_dimension_numbers<[1], [0], [0], [1], [0, 0, 1, 1], [], []>} : vector<144x12xbf16>, vector<12x128xbf16>, vector<144x128xf32> -> vector<144x128xf32>
    %8 = arith.addf %3, %7 : vector<144x128xf32>
    %c0_10 = arith.constant 0 : index
    %c0_11 = arith.constant 0 : index
    %c36 = arith.constant 36 : index
    %c0_12 = arith.constant 0 : index
    %9 = vector.load %arg2[%c0_10, %c0_11, %c36, %c0_12] : memref<1x1x180x12xbf16, #tpu.memory_space<vmem>>, vector<1x1x144x12xbf16>
    %10 = vector.shape_cast %9 : vector<1x1x144x12xbf16> to vector<144x12xbf16>
    %c24 = arith.constant 24 : index
    %c0_13 = arith.constant 0 : index
    %11 = vector.load %arg3[%c24, %c0_13] : memref<36x128xbf16, #tpu.memory_space<vmem>>, vector<12x128xbf16>
    %cst_14 = arith.constant dense<0.000000e+00> : vector<144x128xf32>
    %12 = tpu.matmul %10, %11, %cst_14 {dimension_numbers = #tpu.dot_dimension_numbers<[1], [0], [0], [1], [0, 0, 1, 1], [], []>} : vector<144x12xbf16>, vector<12x128xbf16>, vector<144x128xf32> -> vector<144x128xf32>
    %13 = arith.addf %8, %12 : vector<144x128xf32>
    %c0_15 = arith.constant 0 : index
    %c0_16 = arith.constant 0 : index
    %14 = vector.load %arg4[%c0_15, %c0_16] : memref<1x128xf32, #tpu.memory_space<vmem>>, vector<1x128xf32>
    %15 = vector.broadcast %14 : vector<1x128xf32> to vector<144x128xf32>
    %16 = arith.addf %13, %15 : vector<144x128xf32>
    %cst_17 = arith.constant 0.000000e+00 : f32
    %17 = vector.broadcast %cst_17 : f32 to vector<144x128xf32>
    %18 = arith.maximumf %16, %17 : vector<144x128xf32>
    %19 = arith.truncf %18 : vector<144x128xf32> to vector<144x128xbf16>
    %c0_18 = arith.constant 0 : index
    %c0_19 = arith.constant 0 : index
    %c0_20 = arith.constant 0 : index
    %c0_21 = arith.constant 0 : index
    %20 = vector.load %arg5[%c0_18, %c0_19, %c0_20, %c0_21] : memref<1x1x144x128xbf16, #tpu.memory_space<vmem>>, vector<1x1x144x128xbf16>
    %21 = vector.shape_cast %20 : vector<1x1x144x128xbf16> to vector<144x128xbf16>
    %22 = vector.shape_cast %19 : vector<144x128xbf16> to vector<1x1x144x128xbf16>
    tpu.vector_store %arg5[%c0_18, %c0_19, %c0_20, %c0_21], %22 {strides = array<i32>} : memref<1x1x144x128xbf16, #tpu.memory_space<vmem>>, vector<1x1x144x128xbf16>,
    return
  }
  func.func @transform_0(%arg0: i32, %arg1: i32) -> (i32, i32, i32, i32) {
    %c0_i32 = arith.constant 0 : i32
    %c0_i32_0 = arith.constant 0 : i32
    %c0_i32_1 = arith.constant 0 : i32
    return %arg0, %arg1, %c0_i32, %c0_i32_0 : i32, i32, i32, i32
  }
  func.func @transform_1(%arg0: i32, %arg1: i32) -> (i32, i32) {
    %c0_i32 = arith.constant 0 : i32
    %c0_i32_0 = arith.constant 0 : i32
    %c0_i32_1 = arith.constant 0 : i32
    return %c0_i32, %c0_i32_0 : i32, i32
  }
  func.func @transform_2(%arg0: i32, %arg1: i32) -> (i32, i32) {
    %c0_i32 = arith.constant 0 : i32
    %c0_i32_0 = arith.constant 0 : i32
    %c0_i32_1 = arith.constant 0 : i32
    return %c0_i32, %c0_i32_0 : i32, i32
  }
  func.func @transform_3(%arg0: i32, %arg1: i32) -> (i32, i32, i32, i32) {
    %c0_i32 = arith.constant 0 : i32
    %c0_i32_0 = arith.constant 0 : i32
    %c0_i32_1 = arith.constant 0 : i32
    return %arg0, %arg1, %c0_i32, %c0_i32_0 : i32, i32, i32, i32
  }
}

</mosaic_0001>

<bundles_post_ra>
// kernel: basic_conv2d.1
= control target key start
LH: loop header
LB: loop body
LE: loop exit
PB: predicated region body
PF: predicated region fallthrough
CT: control target
= control target key end

     0   :  { %s1498_s12 = smov 0   ;;  %s1500_s13 = smov 0   ;;  %s1798_s0 = inlined_call_operand.vmem [shape: bf16[2,2,180,12], index: 0, kind: input, shape index: {}]   ;;  %s1799_s1 = inlined_call_operand.vmem [shape: bf16[36,128], index: 1, kind: input, shape index: {}]   ;;  %s1800_s2 = inlined_call_operand.vmem [shape: f32[1,128], index: 2, kind: input, shape index: {}]   ;;  %s1801_s3 = inlined_call_operand.vmem [shape: bf16[2,2,144,128], index: 3, kind: output, shape index: {}]  }
   0x1   :  { %s1502_s14 = smov 0   ;;  %s1504_s15 = smov 0  }
   0x2   :  { %s1506_s16 = smov 0  }
   0x3 LB: > { %s22_s17 = sadd.s32 1, %s1466_s14  ;;  %s25_s18 = sadd.s32 1, %s1470_s15  ;;  %s1474_s16 = sphi %s1506_s16, %s13_s16   ;;  %s1470_s15 = sphi %s1504_s15, %s1805_s15   ;;  %s1466_s14 = sphi %s1502_s14, %s1804_s14   ;;  %s1462_s13 = sphi %s1500_s13, %s1803_s13   ;;  %s1458_s12 = sphi %s1498_s12, %s1802_s12  }
   0x4   : > { %p23_p0 = scmp.ge.s32.totalorder %s22_s17, 2  ;;  %p1072_p1 = scmp.ge.s32.totalorder %s1474_s16, 1 }
   0x5   : > { %p157_p2 = scmp.lt.s32.totalorder %s1474_s16, 5 }
   0x6   : > { %s1807_s17 = smov (%p23_p0, %s22_s17), 0  ;;  %s1809_s18 = smov (!%p23_p0, %s25_s18), %s1470_s15 }
   0x7   : > { %p158_p3 = pnand %p1072_p1, %p157_p2  ;;  %p27_p4 = scmp.ge.s32.totalorder %s1809_s18, 2 }
   0x8   : > { %v1476_v0 = vmov (!%p158_p3), 0.0   ;;  %v1411_v1 = vld [vmem:[%s1799_s1 + $0x4] sm:$0xfc] (!%p158_p3)   ;;  %p189_p5 = scmp.lt.s32.totalorder (!%p158_p3), %s1462_s13, 1  ;;  %p191_p6 = scmp.lt.s32.totalorder (!%p158_p3), %s1458_s12, 1  ;;  %vm336_vm0 = vcmask (!%p158_p3), 1045504  }
   0x9   : > { %s1811_s18 = smov (%p27_p4, %s1809_s18), 0  ;;  %161 = sbr.rel (%p158_p3) target bundleno = 356 (0x164), region = 32 }
   0xa   : > { %1249 = vmatprep.subr.bf16.mxu0 (!%p158_p3), %v1476_v0  ;;  %1363 = vmatprep.subr.bf16.mxu1 (!%p158_p3), %v1476_v0  ;;  %vm1477_vm1 = vmmov (!%p158_p3), 0   ;;  %v307_v2 = vrot.slane (!%p158_p3), %v1411_v1, 2  ;;  %v1416_v4 = vld [vmem:[%s1799_s1 + $0xc] sm:$0x3f] (!%p158_p3)   ;;  %v1417_v6 = vld [vmem:[%s1799_s1] sm:$0x3f] (!%p158_p3)  }
   0xb   : > { %1251 = vmatprep.mubr.msk.bf16.mxu0 (!%p158_p3), %vm1477_vm1, %v1476_v0  ;;  %1271 = vmatprep.mubr.msk.bf16.mxu1 (!%p158_p3), %vm1477_vm1, %v1476_v0  ;;  %vm282_vm2 = vcmask (!%p158_p3), 1046528   ;;  %vm308_vm3 = vcmask (!%p158_p3), 97280   ;;  %v715_v17 = vsel (!%p158_p3), %vm336_vm0, %v1416_v4, 0  ;;  %v486_v20 = vsel (!%p158_p3), %vm336_vm0, %v1417_v6, 0 }
   0xc   : > { %v338_v3 = vsel (!%p158_p3), %vm336_vm0, %v307_v2, 0 }
   0xd   : > { %1250 = vmatpush3.bf16.msra.mxu0 (!%p158_p3), %v338_v3  ;;  %1364 = vmatpush3.bf16.msra.mxu1 (!%p158_p3), %v338_v3 }
   0xe   : > { %1325 = vmatprep.subr.bf16.mxu0 (!%p158_p3), %v1476_v0  ;;  %1287 = vmatprep.subr.bf16.mxu1 (!%p158_p3), %v1476_v0 }
  0x10   : > { %s1813_s13 = smov (!%p189_p5, %s1462_s13), 1  ;;  %s1815_s12 = smov (!%p191_p6, %s1458_s12), 1 }
  0x11   : > { %s1366_s21 = smul.u32 46, %s1813_s13 }
  0x12   : > { %s1365_s22 = smul.u32 23, %s1815_s12 }
  0x13   : > { %s1367_s5 = smul.u32 18, %s1815_s12 }
  0x14   : > { %s195_s23 = sadd.s32 %s1366_s21, %s1365_s22  ;;  %s1368_s6 = smul.u32 36, %s1813_s13 }
  0x15   : > { %s1073_s24 = sshll.u32 %s195_s23, 2 }
  0x16   : > { %s1549_s27 = scalar_lea.vmem %s1798_s0, %s1073_s24  ;;  %s204_s9 = sadd.s32 %s1368_s6, %s1367_s5 }
  0x17   : > { %v1555_v5 = vld [vmem:[%s1549_s27 + $0xc] sm:$0xf]  ;;  %v228_v7 = vld [vmem:[%s1549_s27 + $0x8] sm:$0xe]  ;;  %v1562_v8 = vld [vmem:[%s1549_s27 + $0x10] sm:$0xff]   ;;  %s1074_s10 = sshll.u32 %s204_s9, 2 }
  0x18   : > { %v1075_v9 = vcombine.low %v228_v7, %v1555_v5  ;;  %v284_v10 = vrot.slane %v1562_v8, 1  ;;  %v1567_v11 = vld [vmem:[%s1549_s27 + $0x30] sm:$0xff]   ;;  %v1570_v12 = vld [vmem:[%s1549_s27 + $0x38] sm:$0xff]   ;;  %v1579_v18 = vld [vmem:[%s1549_s27 + $0x40] sm:$0xff]   ;;  %s1744_s13 = scalar_lea.vmem %s1801_s3, %s1074_s10 }
  0x19   : > { %v1573_v14 = vld [vmem:[%s1549_s27 + $0x18] sm:$0xff]   ;;  %v292_v15 = vrot.slane %v1567_v11, 1  ;;  %v294_v16 = vrot.slane %v1570_v12, 1  ;;  %v296_v23 = vrot.slane %v1579_v18, 1  ;;  %v1593_v24 = vld [vmem:[%s1549_s27 + $0x20] sm:$0xff]   ;;  %v1421_v25 = vld [vmem:[%s1549_s27 + $0x48] sm:$0xff]  }
  0x1a   : > { %v283_v13 = vrot.slane %v1075_v9, 1  ;;  %v286_v22 = vrot.slane %v1573_v14, 1  ;;  %v288_v28 = vrot.slane %v1593_v24, 1  ;;  %v1601_v29 = vld [vmem:[%s1549_s27 + $0x28] sm:$0xff]   ;;  %v298_v30 = vrot.slane %v1421_v25, 1  ;;  %v1430_v31 = vld [vmem:[%s1549_s27 + $0x30] sm:$0xff]  }
  0x1b   : > { %v295_v21 = vsel %vm282_vm2, %v292_v15, %v294_v16  ;;  %v297_v27 = vsel %vm282_vm2, %v294_v16, %v296_v23  ;;  %v668_v32 = vrot.slane %v1601_v29, 2  ;;  %v1431_v33 = vld [vmem:[%s1549_s27 + $0x38] sm:$0xff]   ;;  %v670_v34 = vrot.slane %v1430_v31, 2  ;;  %v1432_v35 = vld [vmem:[%s1549_s27 + $0x40] sm:$0xff]   ;;  %v1433_v38 = vld [vmem:[%s1549_s27 + $0x48] sm:$0xff]  }
  0x1c   : > { %v285_v19 = vsel %vm282_vm2, %v283_v13, %v284_v10  ;;  %1272 = vmatmul.mubr.msk.bf16.vlgmr.msra.gmra.mrb[0].mxu1 %vm308_vm3, %v295_v21  ;;  %v287_v26 = vsel %vm282_vm2, %v284_v10, %v286_v22  ;;  %v1423_v36 = vld [vmem:[%s1549_s27 + $0x50] ss:$0 sps:$4 sm:$0x11]   ;;  %v672_v37 = vrot.slane %v1431_v33, 2  ;;  %v289_v39 = vsel %vm282_vm2, %v286_v22, %v288_v28  ;;  %v1422_v40 = vld [vmem:[%s1549_s27 + $0x28] sm:$0xff]   ;;  %v1424_v59 = vld [vmem:[%s1549_s27] sm:$0xff]  }
  0x1d   : > { %1252 = vmatmul.mubr.msk.bf16.vlgmr.msra.gmra.mrb[0].mxu0 %vm308_vm3, %v285_v19  ;;  %1288 = vmatpush3.bf16.msra.mxu1 %v486_v20  ;;  %v671_v41 = vsel %vm336_vm0, %v668_v32, %v670_v34  ;;  %v674_v42 = vrot.slane %v1432_v35, 2  ;;  %v1434_v43 = vld [vmem:[%s1549_s27 + $0x50] sm:$0xff]   ;;  %v299_v44 = vsel %vm282_vm2, %v296_v23, %v298_v30  ;;  %v676_v46 = vrot.slane %v1433_v38, 2  ;;  %v1435_v47 = vld [vmem:[%s1549_s27 + $0x58] ss:$0 sps:$4 sm:$0x33]  }
  0x1e   : > { %1326 = vmatpush3.bf16.msra.mxu0 %v715_v17  ;;  %1255 = vmatprep.mubr.msk.bf16.mxu0 %vm1477_vm1, %v1476_v0  ;;  %v673_v45 = vsel %vm336_vm0, %v670_v34, %v672_v37  ;;  %v678_v49 = vrot.slane %v1434_v43, 2  ;;  %v680_v51 = vrot.slane %v1435_v47, 2  ;;  %v290_v52 = vrot.slane %v1422_v40, 1  ;;  %v1426_v60 = vld [vmem:[%s1549_s27 + $0x10] sm:$0xfc]   ;;  %v1427_v61 = vld [vmem:[%s1549_s27 + $0x18] sm:$0xff]  }
  0x1f   : > { %1275 = vmatprep.mubr.msk.bf16.mxu1 %vm1477_vm1, %v1476_v0  ;;  %v675_v48 = vsel %vm336_vm0, %v672_v37, %v674_v42  ;;  %v677_v50 = vsel %vm336_vm0, %v674_v42, %v676_v46  ;;  %v300_v54 = vrot.slane %v1423_v36, 1  ;;  %v663_v62 = vrot.slane %v1426_v60, 2  ;;  %v210_v1 = vld [vmem:[%s1549_s27 + $0x8] sm:$0xf]  ;;  %v1428_v4 = vld [vmem:[%s1549_s27 + $0x20] sm:$0xff]  }
  0x20   : > { %v679_v53 = vsel %vm336_vm0, %v676_v46, %v678_v49  ;;  %v681_v55 = vsel %vm336_vm0, %v678_v49, %v680_v51  ;;  %v291_v56 = vsel %vm282_vm2, %v288_v28, %v290_v52  ;;  %v293_v58 = vsel %vm282_vm2, %v290_v52, %v292_v15 }
  0x21   : > { %v301_v57 = vsel %vm282_vm2, %v298_v30, %v300_v54  ;;  %v664_v63 = vrot.slane %v1427_v61, 2  ;;  %v1096_v2 = vcombine.low %v210_v1, %v1555_v5  ;;  %v666_v6 = vrot.slane %v1428_v4, 2 }
  0x23   : > { %v665_v3 = vsel %vm336_vm0, %v663_v62, %v664_v63  ;;  %v667_v7 = vsel %vm336_vm0, %v664_v63, %v666_v6  ;;  %v669_v5 = vsel %vm336_vm0, %v666_v6, %v668_v32 }
  0x24   : > { %1276 = vmatmul.mubr.msk.bf16.gmra.mrb[4].mxu1 %vm308_vm3, %v297_v27 }
  0x25   : > { %1256 = vmatmul.mubr.msk.bf16.gmra.mrb[4].mxu0 %vm308_vm3, %v287_v26  ;;  %1279 = vmatprep.mubr.msk.bf16.mxu1 %vm1477_vm1, %v1476_v0 }
  0x26   : > { %1259 = vmatprep.mubr.msk.bf16.mxu0 %vm1477_vm1, %v1476_v0 }
  0x2c   : > { %1280 = vmatmul.mubr.msk.bf16.gmra.mrb[8].mxu1 %vm308_vm3, %v299_v44 }
  0x2d   : > { %1260 = vmatmul.mubr.msk.bf16.gmra.mrb[8].mxu0 %vm308_vm3, %v289_v39  ;;  %1283 = vmatprep.mubr.msk.bf16.mxu1 %vm1477_vm1, %v1476_v0 }
  0x2e   : > { %1263 = vmatprep.mubr.msk.bf16.mxu0 %vm1477_vm1, %v1476_v0 }
  0x34   : > { %1284 = vmatmul.mubr.msk.bf16.gmra.mrb[12].mxu1 %vm308_vm3, %v301_v57 }
  0x35   : > { %1264 = vmatmul.mubr.msk.bf16.gmra.mrb[12].mxu0 %vm308_vm3, %v291_v56  ;;  %1289 = vmatprep.mubr.msk.bf16.mxu1 %vm1477_vm1, %v1476_v0 }
  0x36   : > { %1267 = vmatprep.mubr.msk.bf16.mxu0 %vm1477_vm1, %v1476_v0 }
  0x3c   : > { %1290 = vmatmul.mubr.msk.bf16.vlgmr.msra.gmra.mrb[16].mxu1 %vm308_vm3, %v1424_v59 }
  0x3d   : > { %1268 = vmatmul.mubr.msk.bf16.gmra.mrb[16].mxu0 %vm308_vm3, %v293_v58  ;;  %1293 = vmatprep.mubr.msk.bf16.mxu1 %vm1477_vm1, %v1476_v0 }
  0x3e   : > { %1327 = vmatprep.mubr.msk.bf16.mxu0 %vm1477_vm1, %v1476_v0 }
  0x44   : > { %1294 = vmatmul.mubr.msk.bf16.gmra.mrb[20].mxu1 %vm308_vm3, %v1096_v2 }
  0x45   : > { %1328 = vmatmul.mubr.msk.bf16.vlgmr.msra.gmra.mrb[20].mxu0 %vm308_vm3, %v665_v3  ;;  %1297 = vmatprep.mubr.msk.bf16.mxu1 %vm1477_vm1, %v1476_v0 }
  0x46   : > { %1331 = vmatprep.mubr.msk.bf16.mxu0 %vm1477_vm1, %v1476_v0 }
  0x4c   : > { %1298 = vmatmul.mubr.msk.bf16.gmra.mrb[24].mxu1 %vm308_vm3, %v1562_v8 }
  0x4d   : > { %1332 = vmatmul.mubr.msk.bf16.gmra.mrb[24].mxu0 %vm308_vm3, %v667_v7  ;;  %1301 = vmatprep.mubr.msk.bf16.mxu1 %vm1477_vm1, %v1476_v0 }
  0x4e   : > { %1335 = vmatprep.mubr.msk.bf16.mxu0 %vm1477_vm1, %v1476_v0 }
  0x54   : > { %1302 = vmatmul.mubr.msk.bf16.gmra.mrb[28].mxu1 %vm308_vm3, %v1573_v14 }
  0x55   : > { %1336 = vmatmul.mubr.msk.bf16.gmra.mrb[28].mxu0 %vm308_vm3, %v669_v5  ;;  %1305 = vmatprep.mubr.msk.bf16.mxu1 %vm1477_vm1, %v1476_v0 }
  0x56   : > { %1339 = vmatprep.mubr.msk.bf16.mxu0 %vm1477_vm1, %v1476_v0 }
  0x5c   : > { %1306 = vmatmul.mubr.msk.bf16.gmra.mrb[32].mxu1 %vm308_vm3, %v1593_v24 }
  0x5d   : > { %1340 = vmatmul.mubr.msk.bf16.gmra.mrb[32].mxu0 %vm308_vm3, %v671_v41  ;;  %1309 = vmatprep.mubr.msk.bf16.mxu1 %vm1477_vm1, %v1476_v0 }
  0x5e   : > { %1343 = vmatprep.mubr.msk.bf16.mxu0 %vm1477_vm1, %v1476_v0 }
  0x64   : > { %1310 = vmatmul.mubr.msk.bf16.gmra.mrb[36].mxu1 %vm308_vm3, %v1422_v40 }
  0x65   : > { %1344 = vmatmul.mubr.msk.bf16.gmra.mrb[36].mxu0 %vm308_vm3, %v673_v45  ;;  %1313 = vmatprep.mubr.msk.bf16.mxu1 %vm1477_vm1, %v1476_v0 }
  0x66   : > { %1347 = vmatprep.mubr.msk.bf16.mxu0 %vm1477_vm1, %v1476_v0 }
  0x6c   : > { %1314 = vmatmul.mubr.msk.bf16.gmra.mrb[40].mxu1 %vm308_vm3, %v1567_v11 }
  0x6d   : > { %1348 = vmatmul.mubr.msk.bf16.gmra.mrb[40].mxu0 %vm308_vm3, %v675_v48  ;;  %1317 = vmatprep.mubr.msk.bf16.mxu1 %vm1477_vm1, %v1476_v0 }
  0x6e   : > { %1351 = vmatprep.mubr.msk.bf16.mxu0 %vm1477_vm1, %v1476_v0 }
  0x74   : > { %1318 = vmatmul.mubr.msk.bf16.gmra.mrb[44].mxu1 %vm308_vm3, %v1570_v12 }
  0x75   : > { %1352 = vmatmul.mubr.msk.bf16.gmra.mrb[44].mxu0 %vm308_vm3, %v677_v50  ;;  %1321 = vmatprep.mubr.msk.bf16.mxu1 %vm1477_vm1, %v1476_v0  ;;  %v1737_v50 = vld [vmem:[%s1800_s2] ss:$0 sm:$0xff] }
  0x76   : > { %1355 = vmatprep.mubr.msk.bf16.mxu0 %vm1477_vm1, %v1476_v0 }
  0x7c   : > { %1322 = vmatmul.mubr.msk.bf16.gmra.mrb[48].mxu1 %vm308_vm3, %v1579_v18 }
  0x7d   : > { %1356 = vmatmul.mubr.msk.bf16.gmra.mrb[48].mxu0 %vm308_vm3, %v679_v53 }
  0x7e   : > { %1359 = vmatprep.mubr.msk.bf16.mxu0 %vm1477_vm1, %v1476_v0 }
  0x85   : > { %1360 = vmatmul.mubr.msk.bf16.gmra.mrb[52].mxu0 %vm308_vm3, %v681_v55 }
  0xef   : > { %v1708_v10 = vpop.f32.mrb[0].mxu1 }
  0xf0   : > { %v374_v8 = vpop.f32.mrb[0].mxu0  ;;  %v1273_v12 = vpop.f32.mrb[1].mxu1 }
  0xf1   : > { %v1253_v9 = vpop.f32.mrb[1].mxu0  ;;  %v1710_v14 = vpop.f32.mrb[2].mxu1 }
  0xf2   : > { %v377_v11 = vpop.f32.mrb[2].mxu0  ;;  %v1274_v15 = vpop.f32.mrb[3].mxu1 }
  0xf3   : > { %v1254_v13 = vpop.f32.mrb[3].mxu0 }
  0xf7   : > { %v1712_v19 = vpop.f32.mrb[4].mxu1 }
  0xf8   : > { %v382_v16 = vpop.f32.mrb[4].mxu0  ;;  %v1277_v20 = vpop.f32.mrb[5].mxu1 }
  0xf9   : > { %v1257_v17 = vpop.f32.mrb[5].mxu0  ;;  %v1714_v0 = vpop.f32.mrb[6].mxu1 }
  0xfa   : > { %v385_v18 = vpop.f32.mrb[6].mxu0  ;;  %v1278_v22 = vpop.f32.mrb[7].mxu1 }
  0xfb   : > { %v1258_v21 = vpop.f32.mrb[7].mxu0 }
  0xff   : > { %v1716_v25 = vpop.f32.mrb[8].mxu1 }
 0x100   : > { %v390_v23 = vpop.f32.mrb[8].mxu0  ;;  %v1281_v27 = vpop.f32.mrb[9].mxu1 }
 0x101   : > { %v1261_v24 = vpop.f32.mrb[9].mxu0  ;;  %v1718_v29 = vpop.f32.mrb[10].mxu1 }
 0x102   : > { %v393_v26 = vpop.f32.mrb[10].mxu0  ;;  %v1282_v30 = vpop.f32.mrb[11].mxu1 }
 0x103   : > { %v1262_v28 = vpop.f32.mrb[11].mxu0 }
 0x107   : > { %v1722_v33 = vpop.f32.mrb[12].mxu1 }
 0x108   : > { %v1720_v31 = vpop.f32.mrb[12].mxu0  ;;  %v1285_v35 = vpop.f32.mrb[13].mxu1 }
 0x109   : > { %v1265_v32 = vpop.f32.mrb[13].mxu0  ;;  %v1726_v37 = vpop.f32.mrb[14].mxu1 }
 0x10a   : > { %v1724_v34 = vpop.f32.mrb[14].mxu0  ;;  %v1286_v38 = vpop.f32.mrb[15].mxu1 }
 0x10b   : > { %v1266_v36 = vpop.f32.mrb[15].mxu0 }
 0x10f   : > { %v522_v40 = vpop.f32.mrb[16].mxu1 }
 0x110   : > { %v1728_v39 = vpop.f32.mrb[16].mxu0  ;;  %v523_v42 = vadd.f32 %v522_v40, %v374_v8  ;;  %v1291_v43 = vpop.f32.mrb[17].mxu1 }
 0x111   : > { %v1269_v41 = vpop.f32.mrb[17].mxu0  ;;  %v525_v45 = vpop.f32.mrb[18].mxu1 }
 0x112   : > { %v1730_v44 = vpop.f32.mrb[18].mxu0  ;;  %v526_v47 = vadd.f32 %v525_v45, %v377_v11  ;;  %v1292_v48 = vpop.f32.mrb[19].mxu1 }
 0x113   : > { %v1270_v46 = vpop.f32.mrb[19].mxu0 }
 0x117   : > { %v530_v51 = vpop.f32.mrb[20].mxu1 }
 0x118   : > { %v751_v49 = vpop.f32.mrb[20].mxu0  ;;  %v531_v54 = vadd.f32 %v530_v51, %v382_v16  ;;  %v1295_v55 = vpop.f32.mrb[21].mxu1 }
 0x119   : > { %v822_v52 = vadd.f32 %v751_v49, %v523_v42  ;;  %v1329_v53 = vpop.f32.mrb[21].mxu0  ;;  %v533_v58 = vpop.f32.mrb[22].mxu1 }
 0x11a   : > { %v754_v56 = vpop.f32.mrb[22].mxu0  ;;  %v534_v61 = vadd.f32 %v533_v58, %v385_v18  ;;  %v1296_v62 = vpop.f32.mrb[23].mxu1 }
 0x11b   : > { %v847_v57 = vadd.f32 %v1737_v50, %v822_v52  ;;  %v823_v59 = vadd.f32 %v754_v56, %v526_v47  ;;  %v1330_v60 = vpop.f32.mrb[23].mxu0 }
 0x11d   : > { %v848_v63 = vadd.f32 %v1737_v50, %v823_v59  ;;  %v865_v1 = vmax.f32 %v847_v57, 0.0 }
 0x11f   : > { %v866_v2 = vmax.f32 %v848_v63, 0.0  ;;  %v538_v6 = vpop.f32.mrb[24].mxu1 }
 0x120   : > { %v759_v3 = vpop.f32.mrb[24].mxu0  ;;  %v539_v8 = vadd.f32 %v538_v6, %v390_v23  ;;  %v1299_v9 = vpop.f32.mrb[25].mxu1 }
 0x121   : > { %v1169_v4 = vpack.c.bf16 %v866_v2, %v865_v1  ;;  %v824_v7 = vadd.f32 %v759_v3, %v531_v54  ;;  %v1333_v5 = vpop.f32.mrb[25].mxu0  ;;  %v541_v13 = vpop.f32.mrb[26].mxu1 }
 0x122   : > { %v762_v11 = vpop.f32.mrb[26].mxu0  ;;  %v542_v17 = vadd.f32 %v541_v13, %v393_v26  ;;  %v1300_v18 = vpop.f32.mrb[27].mxu1 }
 0x123   : > { %1170 = vst [vmem:[%s1744_s13] sm:$0xff] %v1169_v4   ;;  %v849_v12 = vadd.f32 %v1737_v50, %v824_v7  ;;  %v825_v15 = vadd.f32 %v762_v11, %v534_v61  ;;  %v1334_v16 = vpop.f32.mrb[27].mxu0 }
 0x125   : > { %v850_v20 = vadd.f32 %v1737_v50, %v825_v15  ;;  %v867_v21 = vmax.f32 %v849_v12, 0.0 }
 0x127   : > { %v868_v22 = vmax.f32 %v850_v20, 0.0  ;;  %v546_v28 = vpop.f32.mrb[28].mxu1 }
 0x128   : > { %v767_v24 = vpop.f32.mrb[28].mxu0  ;;  %v547_v32 = vadd.f32 %v546_v28, %v1720_v31  ;;  %v1303_v35 = vpop.f32.mrb[29].mxu1 }
 0x129   : > { %v1174_v27 = vpack.c.bf16 %v868_v22, %v867_v21  ;;  %v826_v30 = vadd.f32 %v767_v24, %v539_v8  ;;  %v1337_v23 = vpop.f32.mrb[29].mxu0  ;;  %v549_v40 = vpop.f32.mrb[30].mxu1 }
 0x12a   : > { %v770_v36 = vpop.f32.mrb[30].mxu0  ;;  %v550_v42 = vadd.f32 %v549_v40, %v1724_v34  ;;  %v1304_v43 = vpop.f32.mrb[31].mxu1 }
 0x12b   : > { %1211 = vst [vmem:[%s1744_s13 + $0x8] sm:$0xff] %v1174_v27   ;;  %v851_v38 = vadd.f32 %v1737_v50, %v826_v30  ;;  %v827_v26 = vadd.f32 %v770_v36, %v542_v17  ;;  %v1338_v41 = vpop.f32.mrb[31].mxu0 }
 0x12d   : > { %v852_v45 = vadd.f32 %v1737_v50, %v827_v26  ;;  %v869_v46 = vmax.f32 %v851_v38, 0.0 }
 0x12f   : > { %v870_v47 = vmax.f32 %v852_v45, 0.0  ;;  %v554_v51 = vpop.f32.mrb[32].mxu1 }
 0x130   : > { %v775_v48 = vpop.f32.mrb[32].mxu0  ;;  %v555_v53 = vadd.f32 %v554_v51, %v1728_v39  ;;  %v1307_v54 = vpop.f32.mrb[33].mxu1 }
 0x131   : > { %v1179_v49 = vpack.c.bf16 %v870_v47, %v869_v46  ;;  %v828_v31 = vadd.f32 %v775_v48, %v547_v32  ;;  %v1341_v52 = vpop.f32.mrb[33].mxu0  ;;  %v557_v57 = vpop.f32.mrb[34].mxu1 }
 0x132   : > { %v778_v55 = vpop.f32.mrb[34].mxu0  ;;  %v558_v59 = vadd.f32 %v557_v57, %v1730_v44  ;;  %v1308_v60 = vpop.f32.mrb[35].mxu1 }
 0x133   : > { %1212 = vst [vmem:[%s1744_s13 + $0x10] sm:$0xff] %v1179_v49   ;;  %v853_v56 = vadd.f32 %v1737_v50, %v828_v31  ;;  %v829_v34 = vadd.f32 %v778_v55, %v550_v42  ;;  %v1342_v58 = vpop.f32.mrb[35].mxu0 }
 0x135   : > { %v854_v61 = vadd.f32 %v1737_v50, %v829_v34  ;;  %v871_v62 = vmax.f32 %v853_v56, 0.0 }
 0x137   : > { %v872_v63 = vmax.f32 %v854_v61, 0.0  ;;  %v562_v3 = vpop.f32.mrb[36].mxu1 }
 0x138   : > { %v783_v1 = vpop.f32.mrb[36].mxu0  ;;  %v563_v6 = vadd.f32 %v562_v3, %v1708_v10  ;;  %v1311_v7 = vpop.f32.mrb[37].mxu1 }
 0x139   : > { %v1184_v2 = vpack.c.bf16 %v872_v63, %v871_v62  ;;  %v830_v39 = vadd.f32 %v783_v1, %v555_v53  ;;  %v1345_v4 = vpop.f32.mrb[37].mxu0  ;;  %v565_v9 = vpop.f32.mrb[38].mxu1 }
 0x13a   : > { %v786_v5 = vpop.f32.mrb[38].mxu0  ;;  %v566_v12 = vadd.f32 %v565_v9, %v1710_v14  ;;  %v1312_v13 = vpop.f32.mrb[39].mxu1 }
 0x13b   : > { %1213 = vst [vmem:[%s1744_s13 + $0x18] sm:$0xff] %v1184_v2   ;;  %v855_v8 = vadd.f32 %v1737_v50, %v830_v39  ;;  %v831_v44 = vadd.f32 %v786_v5, %v558_v59  ;;  %v1346_v11 = vpop.f32.mrb[39].mxu0 }
 0x13d   : > { %v856_v15 = vadd.f32 %v1737_v50, %v831_v44  ;;  %v873_v16 = vmax.f32 %v855_v8, 0.0 }
 0x13f   : > { %v874_v17 = vmax.f32 %v856_v15, 0.0  ;;  %v570_v21 = vpop.f32.mrb[40].mxu1 }
 0x140   : > { %v791_v18 = vpop.f32.mrb[40].mxu0  ;;  %v571_v24 = vadd.f32 %v570_v21, %v1712_v19  ;;  %v1315_v27 = vpop.f32.mrb[41].mxu1 }
 0x141   : > { %v1189_v20 = vpack.c.bf16 %v874_v17, %v873_v16  ;;  %v832_v10 = vadd.f32 %v791_v18, %v563_v6  ;;  %v1349_v22 = vpop.f32.mrb[41].mxu0  ;;  %v573_v23 = vpop.f32.mrb[42].mxu1 }
 0x142   : > { %v794_v28 = vpop.f32.mrb[42].mxu0  ;;  %v574_v35 = vadd.f32 %v573_v23, %v1714_v0  ;;  %v1316_v36 = vpop.f32.mrb[43].mxu1 }
 0x143   : > { %1214 = vst [vmem:[%s1744_s13 + $0x20] sm:$0xff] %v1189_v20   ;;  %v857_v30 = vadd.f32 %v1737_v50, %v832_v10  ;;  %v833_v14 = vadd.f32 %v794_v28, %v566_v12  ;;  %v1350_v32 = vpop.f32.mrb[43].mxu0 }
 0x145   : > { %v858_v38 = vadd.f32 %v1737_v50, %v833_v14  ;;  %v875_v40 = vmax.f32 %v857_v30, 0.0 }
 0x147   : > { %v876_v26 = vmax.f32 %v858_v38, 0.0  ;;  %v578_v43 = vpop.f32.mrb[44].mxu1 }
 0x148   : > { %v799_v41 = vpop.f32.mrb[44].mxu0  ;;  %v579_v46 = vadd.f32 %v578_v43, %v1716_v25  ;;  %v1319_v47 = vpop.f32.mrb[45].mxu1 }
 0x149   : > { %v1194_v42 = vpack.c.bf16 %v876_v26, %v875_v40  ;;  %v834_v19 = vadd.f32 %v799_v41, %v571_v24  ;;  %v1353_v45 = vpop.f32.mrb[45].mxu0  ;;  %v581_v51 = vpop.f32.mrb[46].mxu1 }
 0x14a   : > { %v802_v48 = vpop.f32.mrb[46].mxu0  ;;  %v582_v52 = vadd.f32 %v581_v51, %v1718_v29  ;;  %v1320_v53 = vpop.f32.mrb[47].mxu1 }
 0x14b   : > { %1215 = vst [vmem:[%s1744_s13 + $0x28] sm:$0xff] %v1194_v42   ;;  %v859_v49 = vadd.f32 %v1737_v50, %v834_v19  ;;  %v835_v0 = vadd.f32 %v802_v48, %v574_v35  ;;  %v1354_v31 = vpop.f32.mrb[47].mxu0 }
 0x14d   : > { %v860_v54 = vadd.f32 %v1737_v50, %v835_v0  ;;  %v877_v55 = vmax.f32 %v859_v49, 0.0 }
 0x14f   : > { %v878_v56 = vmax.f32 %v860_v54, 0.0  ;;  %v586_v58 = vpop.f32.mrb[48].mxu1 }
 0x150   : > { %v807_v57 = vpop.f32.mrb[48].mxu0  ;;  %v587_v60 = vadd.f32 %v586_v58, %v1722_v33  ;;  %v1323_v61 = vpop.f32.mrb[49].mxu1 }
 0x151   : > { %v1199_v34 = vpack.c.bf16 %v878_v56, %v877_v55  ;;  %v836_v25 = vadd.f32 %v807_v57, %v579_v46  ;;  %v1357_v59 = vpop.f32.mrb[49].mxu0  ;;  %v589_v1 = vpop.f32.mrb[50].mxu1 }
 0x152   : > { %v810_v62 = vpop.f32.mrb[50].mxu0  ;;  %v590_v3 = vadd.f32 %v589_v1, %v1726_v37  ;;  %v1324_v39 = vpop.f32.mrb[51].mxu1 }
 0x153   : > { %1216 = vst [vmem:[%s1744_s13 + $0x30] sm:$0xff] %v1199_v34   ;;  %v861_v63 = vadd.f32 %v1737_v50, %v836_v25  ;;  %v837_v29 = vadd.f32 %v810_v62, %v582_v52  ;;  %v1358_v2 = vpop.f32.mrb[51].mxu0 }
 0x155   : > { %v862_v4 = vadd.f32 %v1737_v50, %v837_v29  ;;  %v879_v6 = vmax.f32 %v861_v63, 0.0 }
 0x157   : > { %v880_v7 = vmax.f32 %v862_v4, 0.0 }
 0x158   : > { %v815_v5 = vpop.f32.mrb[52].mxu0 }
 0x159   : > { %v1204_v8 = vpack.c.bf16 %v880_v7, %v879_v6  ;;  %v838_v33 = vadd.f32 %v815_v5, %v587_v60  ;;  %v1361_v9 = vpop.f32.mrb[53].mxu0 }
 0x15a   : > { %v818_v44 = vpop.f32.mrb[54].mxu0 }
 0x15b   : > { %1217 = vst [vmem:[%s1744_s13 + $0x38] sm:$0xff] %v1204_v8   ;;  %v863_v11 = vadd.f32 %v1737_v50, %v838_v33  ;;  %v839_v12 = vadd.f32 %v818_v44, %v590_v3  ;;  %v1362_v13 = vpop.f32.mrb[55].mxu0 }
 0x15d   : > { %v864_v15 = vadd.f32 %v1737_v50, %v839_v12  ;;  %v881_v16 = vmax.f32 %v863_v11, 0.0 }
 0x15f   : > { %v882_v37 = vmax.f32 %v864_v15, 0.0 }
 0x161   : > { %v1209_v17 = vpack.c.bf16 %v882_v37, %v881_v16 }
 0x163   : > { %1218 = vst [vmem:[%s1744_s13 + $0x40] sm:$0xff] %v1209_v17  }
 0x164 PF: > { %s13_s16 = sadd.s32 1, %s1474_s16   ;;  %s1802_s12 = smov %s1466_s14 }
 0x165   : > { %p10_p7 = scmp.ge.s32.totalorder %s13_s16, 6   ;;  %s1803_s13 = smov %s1470_s15 }
 0x166   : > { %s1804_s14 = smov %s1807_s17  ;;  %s1805_s15 = smov %s1811_s18 }
 0x167   :  { %12 = sbr.rel (!%p10_p7) target bundleno = 3 (0x3), region = 62 }

</bundles_post_ra>
